<compile_context>
chip_gen: v7x
topology: tpu7x:2x2x1
jax: 0.10.0
libtpu: 0.0.40
codegen_flags: <defaults>
</compile_context>

<pallas_src>
import jax
import jax.numpy as jnp
import numpy as np
from jax.experimental import pallas as pl
from jax.experimental.pallas import tpu as pltpu


IN_F, HID, OUT_F = 12, 128, 5
OUT_PAD = 8          # fc3 output rows padded to a full sublane group
LANE = 128           # TPU lane width; batch tile must be a multiple of this


def _round_up(n, m):
    return ((n + m - 1) // m) * m


def _choose_tile(batch, block_rows):
    """Batch tile (lane axis): multiple of 128, large, but >= 2 grid steps when possible."""
    tm = max(LANE, _round_up(min(int(block_rows), max(int(batch), 1)), LANE))
    if batch > LANE and pl.cdiv(batch, tm) < 2:
        tm = max(LANE, _round_up(pl.cdiv(batch, 2), LANE))
    return tm


def qnet_kernel(xT_ref, w1_ref, b1_ref, w2_ref, b2_ref, w3_ref, b3_ref, oT_ref):
    cdt = w1_ref.dtype                                   # bf16 (default) or f32 operands

    xT = xT_ref[...]                                     # (IN_F, TM), already cast

    # fc1 + ReLU : MXU accumulates in f32; bias / ReLU in f32.
    h1 = jnp.dot(w1_ref[...], xT, preferred_element_type=jnp.float32)      # (HID, TM)
    h1 = jnp.maximum(h1 + b1_ref[...], 0.0)

    # fc2 + ReLU
    h2 = jnp.dot(w2_ref[...], h1.astype(cdt), preferred_element_type=jnp.float32)
    h2 = jnp.maximum(h2 + b2_ref[...], 0.0)                                # (HID, TM)

    # fc3 (rows padded OUT_F -> OUT_PAD, no activation) -> unmasked (8, TM) store.
    out = jnp.dot(w3_ref[...], h2.astype(cdt), preferred_element_type=jnp.float32)
    oT_ref[...] = (out + b3_ref[...]).astype(oT_ref.dtype)                 # (OUT_PAD, TM)


def qnet_forward(x, params, *, block_rows=2048, compute_dtype=jnp.bfloat16):
    """x: (B, 12) float32 -> (B, 5) float32.

    params: torch-native layout — W_i of shape (out_f, in_f), b_i of shape (out_f, 1).
    compute_dtype: dtype of the matmul OPERANDS (weights and activations).
        Default bf16 (MXU-native); accumulation, bias/ReLU and the output are f32.
    block_rows: target batch tile per grid step (rounded to a multiple of 128).
    """
    w1, b1, w2, b2, w3, b3 = params
    B = x.shape[0]

    # One fused transpose+cast pass: kernel sees a lane-dense feature-major slab.
    xT = x.T.astype(compute_dtype)                                         # (IN_F, B)

    # Matmul-operand dtype for weights; biases stay f32.  fc3 padded 5 -> 8 rows.
    w1c = w1.astype(compute_dtype)
    w2c = w2.astype(compute_dtype)
    w3c = jnp.pad(w3.astype(compute_dtype), ((0, OUT_PAD - OUT_F), (0, 0)))
    b3p = jnp.pad(b3, ((0, OUT_PAD - OUT_F), (0, 0)))

    tm = _choose_tile(B, block_rows)
    grid = (pl.cdiv(B, tm),)          # ragged last block handled by Pallas masking

    # Advisory cost estimate for the XLA scheduler.
    flops = 2 * B * (IN_F * HID + HID * HID + HID * OUT_PAD)
    param_bytes = sum(int(a.size) * a.dtype.itemsize
                      for a in (w1c, b1, w2c, b2, w3c, b3p))
    bytes_accessed = int(xT.size) * xT.dtype.itemsize + param_bytes + B * OUT_PAD * 4

    const = lambda arr: pl.BlockSpec(arr.shape, lambda i: (0, 0))   # VMEM-resident

    outT = pl.pallas_call(
        qnet_kernel,
        out_shape=jax.ShapeDtypeStruct((OUT_PAD, B), jnp.float32),
        grid=grid,
        in_specs=[
            pl.BlockSpec((IN_F, tm), lambda i: (0, i)),    # x^T tiled over batch (lanes)
            const(w1c), const(b1),
            const(w2c), const(b2),
            const(w3c), const(b3p),
        ],
        out_specs=pl.BlockSpec((OUT_PAD, tm), lambda i: (0, i)),
        compiler_params=pltpu.CompilerParams(
            dimension_semantics=("parallel",)),
        cost_estimate=pl.CostEstimate(
            flops=flops, transcendentals=0, bytes_accessed=bytes_accessed),
    )(xT, w1c, b1, w2c, b2, w3c, b3p)

    # Back to the torch convention: (B, 5) float32.
    return outT[:OUT_F].T


def init_params(key):
    """Deterministic init mimicking torch.nn.Linear (uniform +/- 1/sqrt(fan_in)).

    Weights stored torch-native (out_features, in_features); biases (out_features, 1)."""
    def linear(k, fan_in, fan_out):
        kw, kb = jax.random.split(k)
        bound = float(1.0 / np.sqrt(fan_in))
        w = jax.random.uniform(kw, (fan_out, fan_in), jnp.float32, -bound, bound)
        b = jax.random.uniform(kb, (fan_out, 1), jnp.float32, -bound, bound)
        return w, b

    k1, k2, k3 = jax.random.split(key, 3)
    w1, b1 = linear(k1, IN_F, HID)
    w2, b2 = linear(k2, HID, HID)
    w3, b3 = linear(k3, HID, OUT_F)
    return (w1, b1, w2, b2, w3, b3)


def qnet_ref(x, params):
    """Exact float64 numpy reference (avoids TPU matmul-precision ambiguity)."""
    w1, b1, w2, b2, w3, b3 = (np.asarray(p, np.float64) for p in params)
    x = np.asarray(x, np.float64)
    h1 = np.maximum(x @ w1.T + b1.T, 0.0)
    h2 = np.maximum(h1 @ w2.T + b2.T, 0.0)
    return h2 @ w3.T + b3.T


if __name__ == "__main__":
    key = jax.random.PRNGKey(0)
    kp, kx1, kx2 = jax.random.split(key, 3)
    params = init_params(kp)

    # 1) Tiny batch (single, partially-filled 128-wide block), full f32 matmuls.
    B1 = 8
    x1 = jax.random.normal(kx1, (B1, IN_F), jnp.float32)
    out1 = jax.block_until_ready(qnet_forward(x1, params, compute_dtype=jnp.float32))
    ref1 = qnet_ref(x1, params)
    assert out1.shape == (B1, OUT_F)
    assert np.allclose(np.asarray(out1, np.float64), ref1, atol=1e-4, rtol=1e-4)

    # 2) Batch not a multiple of the tile: exercises >=2 grid steps and the
    #    ragged last block (tail columns masked on writeback).  f32 operands.
    B2 = 200
    x2 = jax.random.normal(kx2, (B2, IN_F), jnp.float32)
    out2 = jax.block_until_ready(
        qnet_forward(x2, params, block_rows=128, compute_dtype=jnp.float32))
    ref2 = qnet_ref(x2, params)
    assert out2.shape == (B2, OUT_F)
    assert np.allclose(np.asarray(out2, np.float64), ref2, atol=1e-4, rtol=1e-4)

    # 3) Default path: bf16 matmul operands, f32 accumulation (looser tolerance).
    out2_bf16 = jax.block_until_ready(qnet_forward(x2, params, block_rows=128))
    assert out2_bf16.shape == (B2, OUT_F)
    assert bool(jnp.all(jnp.isfinite(out2_bf16)))
    assert np.allclose(np.asarray(out2_bf16, np.float64), ref2, atol=3e-2, rtol=3e-2)

    print("KERNEL_OK")
</pallas_src>

<mosaic_0001>
module attributes {stable_mosaic.version = 11 : i64} {
  func.func @qnet_kernel(%arg0: i32, %arg1: memref<12x128xf32, #tpu.memory_space<vmem>>, %arg2: memref<128x12xf32, #tpu.memory_space<vmem>>, %arg3: memref<128x1xf32, #tpu.memory_space<vmem>>, %arg4: memref<128x128xf32, #tpu.memory_space<vmem>>, %arg5: memref<128x1xf32, #tpu.memory_space<vmem>>, %arg6: memref<8x128xf32, #tpu.memory_space<vmem>>, %arg7: memref<8x1xf32, #tpu.memory_space<vmem>>, %arg8: memref<8x128xf32, #tpu.memory_space<vmem>>) attributes {dimension_semantics = [#tpu.dimension_semantics<parallel>], iteration_bounds = array<i64: 1>, scalar_prefetch = 0 : i64, scratch_operands = 0 : i64, tpu.core_type = #tpu.core_type<tc>, window_params = [{transform_indices = @transform_0, window_bounds = array<i64: 12, 128>}, {pipeline_mode = #tpu.pipeline_mode<synchronous>, transform_indices = @transform_1, window_bounds = array<i64: 128, 12>}, {pipeline_mode = #tpu.pipeline_mode<synchronous>, transform_indices = @transform_2, window_bounds = array<i64: 128, 1>}, {pipeline_mode = #tpu.pipeline_mode<synchronous>, transform_indices = @transform_3, window_bounds = array<i64: 128, 128>}, {pipeline_mode = #tpu.pipeline_mode<synchronous>, transform_indices = @transform_4, window_bounds = array<i64: 128, 1>}, {pipeline_mode = #tpu.pipeline_mode<synchronous>, transform_indices = @transform_5, window_bounds = array<i64: 8, 128>}, {pipeline_mode = #tpu.pipeline_mode<synchronous>, transform_indices = @transform_6, window_bounds = array<i64: 8, 1>}, {transform_indices = @transform_7, window_bounds = array<i64: 8, 128>}]} {
    %c0 = arith.constant 0 : index
    %c0_0 = arith.constant 0 : index
    %0 = vector.load %arg1[%c0, %c0_0] : memref<12x128xf32, #tpu.memory_space<vmem>>, vector<12x128xf32>
    %c0_1 = arith.constant 0 : index
    %c0_2 = arith.constant 0 : index
    %1 = vector.load %arg2[%c0_1, %c0_2] : memref<128x12xf32, #tpu.memory_space<vmem>>, vector<128x12xf32>
    %cst = arith.constant dense<0.000000e+00> : vector<128x128xf32>
    %2 = tpu.matmul %1, %0, %cst {dimension_numbers = #tpu.dot_dimension_numbers<[1], [0], [0], [1], [0, 0, 1, 1], [], []>} : vector<128x12xf32>, vector<12x128xf32>, vector<128x128xf32> -> vector<128x128xf32>
    %c0_3 = arith.constant 0 : index
    %c0_4 = arith.constant 0 : index
    %3 = vector.load %arg3[%c0_3, %c0_4] : memref<128x1xf32, #tpu.memory_space<vmem>>, vector<128x1xf32>
    %4 = vector.broadcast %3 : vector<128x1xf32> to vector<128x128xf32>
    %5 = arith.addf %2, %4 : vector<128x128xf32>
    %cst_5 = arith.constant 0.000000e+00 : f32
    %6 = vector.broadcast %cst_5 : f32 to vector<128x128xf32>
    %7 = arith.maximumf %5, %6 : vector<128x128xf32>
    %c0_6 = arith.constant 0 : index
    %c0_7 = arith.constant 0 : index
    %8 = vector.load %arg4[%c0_6, %c0_7] : memref<128x128xf32, #tpu.memory_space<vmem>>, vector<128x128xf32>
    %cst_8 = arith.constant dense<0.000000e+00> : vector<128x128xf32>
    %9 = tpu.matmul %8, %7, %cst_8 {dimension_numbers = #tpu.dot_dimension_numbers<[1], [0], [0], [1], [0, 0, 1, 1], [], []>} : vector<128x128xf32>, vector<128x128xf32>, vector<128x128xf32> -> vector<128x128xf32>
    %c0_9 = arith.constant 0 : index
    %c0_10 = arith.constant 0 : index
    %10 = vector.load %arg5[%c0_9, %c0_10] : memref<128x1xf32, #tpu.memory_space<vmem>>, vector<128x1xf32>
    %11 = vector.broadcast %10 : vector<128x1xf32> to vector<128x128xf32>
    %12 = arith.addf %9, %11 : vector<128x128xf32>
    %cst_11 = arith.constant 0.000000e+00 : f32
    %13 = vector.broadcast %cst_11 : f32 to vector<128x128xf32>
    %14 = arith.maximumf %12, %13 : vector<128x128xf32>
    %c0_12 = arith.constant 0 : index
    %c0_13 = arith.constant 0 : index
    %15 = vector.load %arg6[%c0_12, %c0_13] : memref<8x128xf32, #tpu.memory_space<vmem>>, vector<8x128xf32>
    %cst_14 = arith.constant dense<0.000000e+00> : vector<8x128xf32>
    %16 = tpu.matmul %15, %14, %cst_14 {dimension_numbers = #tpu.dot_dimension_numbers<[1], [0], [0], [1], [0, 0, 1, 1], [], []>} : vector<8x128xf32>, vector<128x128xf32>, vector<8x128xf32> -> vector<8x128xf32>
    %c0_15 = arith.constant 0 : index
    %c0_16 = arith.constant 0 : index
    %17 = vector.load %arg7[%c0_15, %c0_16] : memref<8x1xf32, #tpu.memory_space<vmem>>, vector<8x1xf32>
    %18 = vector.broadcast %17 : vector<8x1xf32> to vector<8x128xf32>
    %19 = arith.addf %16, %18 : vector<8x128xf32>
    %c0_17 = arith.constant 0 : index
    %c0_18 = arith.constant 0 : index
    %20 = vector.load %arg8[%c0_17, %c0_18] : memref<8x128xf32, #tpu.memory_space<vmem>>, vector<8x128xf32>
    tpu.vector_store %arg8[%c0_17, %c0_18], %19 {strides = array<i32>} : memref<8x128xf32, #tpu.memory_space<vmem>>, vector<8x128xf32>,
    return
  }
  func.func @transform_0(%arg0: i32) -> (i32, i32) {
    %c0_i32 = arith.constant 0 : i32
    %c0_i32_0 = arith.constant 0 : i32
    return %c0_i32, %arg0 : i32, i32
  }
  func.func @transform_1(%arg0: i32) -> (i32, i32) {
    %c0_i32 = arith.constant 0 : i32
    %c0_i32_0 = arith.constant 0 : i32
    %c0_i32_1 = arith.constant 0 : i32
    return %c0_i32, %c0_i32_0 : i32, i32
  }
  func.func @transform_2(%arg0: i32) -> (i32, i32) {
    %c0_i32 = arith.constant 0 : i32
    %c0_i32_0 = arith.constant 0 : i32
    %c0_i32_1 = arith.constant 0 : i32
    return %c0_i32, %c0_i32_0 : i32, i32
  }
  func.func @transform_3(%arg0: i32) -> (i32, i32) {
    %c0_i32 = arith.constant 0 : i32
    %c0_i32_0 = arith.constant 0 : i32
    %c0_i32_1 = arith.constant 0 : i32
    return %c0_i32, %c0_i32_0 : i32, i32
  }
  func.func @transform_4(%arg0: i32) -> (i32, i32) {
    %c0_i32 = arith.constant 0 : i32
    %c0_i32_0 = arith.constant 0 : i32
    %c0_i32_1 = arith.constant 0 : i32
    return %c0_i32, %c0_i32_0 : i32, i32
  }
  func.func @transform_5(%arg0: i32) -> (i32, i32) {
    %c0_i32 = arith.constant 0 : i32
    %c0_i32_0 = arith.constant 0 : i32
    %c0_i32_1 = arith.constant 0 : i32
    return %c0_i32, %c0_i32_0 : i32, i32
  }
  func.func @transform_6(%arg0: i32) -> (i32, i32) {
    %c0_i32 = arith.constant 0 : i32
    %c0_i32_0 = arith.constant 0 : i32
    %c0_i32_1 = arith.constant 0 : i32
    return %c0_i32, %c0_i32_0 : i32, i32
  }
  func.func @transform_7(%arg0: i32) -> (i32, i32) {
    %c0_i32 = arith.constant 0 : i32
    %c0_i32_0 = arith.constant 0 : i32
    return %c0_i32, %arg0 : i32, i32
  }
}

</mosaic_0001>

<bundles_post_ra>
// kernel: tpu_custom_call.1
= control target key start
LH: loop header
LB: loop body
LE: loop exit
PB: predicated region body
PF: predicated region fallthrough
CT: control target
= control target key end

     0   :  { %vm190_vm0 = vcmask 1043456   ;;  %vm1017_vm1 = vmmov 1   ;;  %vm141_vm3 = vcmask 97280   ;;  %v1018_v4 = vmov 0   ;;  %s1303_s0 = inlined_call_operand.vmem [shape: f32[12,8], index: 0, kind: input, shape index: {}]   ;;  %s1304_s1 = inlined_call_operand.vmem [shape: f32[128,12], index: 1, kind: input, shape index: {}]   ;;  %s1305_s2 = inlined_call_operand.vmem [shape: f32[128,1], index: 2, kind: input, shape index: {}]   ;;  %s1306_s3 = inlined_call_operand.vmem [shape: f32[128,128], index: 3, kind: input, shape index: {}]   ;;  %s1307_s4 = inlined_call_operand.vmem [shape: f32[128,1], index: 4, kind: input, shape index: {}]   ;;  %s1308_s5 = inlined_call_operand.vmem [shape: f32[8,128], index: 5, kind: input, shape index: {}]   ;;  %s1309_s6 = inlined_call_operand.vmem [shape: f32[8,1], index: 6, kind: input, shape index: {}]   ;;  %s1310_s7 = inlined_call_operand.hbm [shape: f32[8,8], index: 7, kind: output, shape index: {}]  }
   0x1   :  { %v27_v0 = vld [vmem:[%s1303_s0] sm:$0xff]  ;;  %v28_v1 = vld [vmem:[%s1303_s0 + $0x8] sm:$0xf]  ;;  %vm924_vm2 = vmpackc.low %vm190_vm0, %vm1017_vm1  ;;  %991 = vset.pattern.permute.xlu0 %v1018_v4  ;;  %992 = vset.pattern.permute.xlu1 %v1018_v4 }
   0x2   :  { %v29_v2 = vld [vmem:[%s1304_s1] sm:$0xff]  ;;  %v923_v3 = vpack.c.bf16 %v28_v1, %v27_v0  ;;  %v30_v5 = vld [vmem:[%s1304_s1 + $0x8] sm:$0xff]  ;;  %v31_v7 = vld [vmem:[%s1304_s1 + $0x10] sm:$0xff] }
   0x3   :  { %808 = vmatprep.mubr.msk.f32.mxu0 %vm141_vm3, %v29_v2  ;;  %v45_v6 = vld [vmem:[%s1305_s2] sm:$0xff]  ;;  %v46_v8 = vld [vmem:[%s1305_s2 + $0x8] sm:$0xff]  ;;  %v47_v9 = vld [vmem:[%s1305_s2 + $0x10] sm:$0xff] }
   0x4   :  { %925 = vmatprep.subr.msk.bf16.mxu0 %vm924_vm2, %v923_v3  ;;  %63 = vperm.xlu0 %991, %v45_v6   ;;  %v32_v10 = vld [vmem:[%s1304_s1 + $0x18] sm:$0xff]  ;;  %v33_v12 = vld [vmem:[%s1304_s1 + $0x20] sm:$0xff]  ;;  %v34_v14 = vld [vmem:[%s1304_s1 + $0x28] sm:$0xff] }
   0x5   :  { %928 = vmatpush3.bf16.msk.msra.mxu0 %vm924_vm2, %v923_v3  ;;  %73 = vperm.xlu1 %992, %v47_v9   ;;  %v48_v11 = vld [vmem:[%s1305_s2 + $0x18] sm:$0xff]  ;;  %v49_v13 = vld [vmem:[%s1305_s2 + $0x20] sm:$0xff]  ;;  %v50_v15 = vld [vmem:[%s1305_s2 + $0x28] sm:$0xff] }
   0x6   :  { %v35_v16 = vld [vmem:[%s1304_s1 + $0x30] sm:$0xff]  ;;  %v36_v18 = vld [vmem:[%s1304_s1 + $0x38] sm:$0xff]  ;;  %v37_v20 = vld [vmem:[%s1304_s1 + $0x40] sm:$0xff] }
   0x7   :  { %v51_v17 = vld [vmem:[%s1305_s2 + $0x30] sm:$0xff]  ;;  %v52_v19 = vld [vmem:[%s1305_s2 + $0x38] sm:$0xff] }
   0x8   :  { %809 = vmatmul.mubr.msk.f32.vlgmr.msra.gmra.mrb[0].mxu0 %vm141_vm3, %v30_v5  ;;  %68 = vperm.xlu0 %991, %v46_v8  }
   0x9   :  { %811 = vmatprep.mubr.msk.f32.mxu0 %vm141_vm3, %v31_v7  ;;  %78 = vperm.xlu1 %992, %v48_v11  }
   0xc   :  { %812 = vmatmul.mubr.msk.f32.gmra.mrb[2].mxu0 %vm141_vm3, %v32_v10  ;;  %83 = vperm.xlu0 %991, %v49_v13  }
   0xd   :  { %814 = vmatprep.mubr.msk.f32.mxu0 %vm141_vm3, %v33_v12  ;;  %88 = vperm.xlu1 %992, %v50_v15  }
  0x10   :  { %815 = vmatmul.mubr.msk.f32.gmra.mrb[4].mxu0 %vm141_vm3, %v34_v14  ;;  %93 = vperm.xlu0 %991, %v51_v17  }
  0x11   :  { %817 = vmatprep.mubr.msk.f32.mxu0 %vm141_vm3, %v35_v16 }
  0x12   :  { %12 = vsyncpa [#allocation3], 0  ;;  %v53_v21 = vld [vmem:[%s1305_s2 + $0x40] sm:$0xff]  ;;  %98 = vperm.xlu1 %992, %v52_v19   ;;  %v38_v22 = vld [vmem:[%s1304_s1 + $0x48] sm:$0xff]  ;;  %vm1020_vm4 = vmmov 0   ;;  %s1022_s29 = smov [#allocation2]  }
  0x13   :  { %v54_v23 = vld [vmem:[%s1305_s2 + $0x48] sm:$0xff]  ;;  %v39_v24 = vld [vmem:[%s1304_s1 + $0x50] sm:$0xff]  ;;  %v40_v26 = vld [vmem:[%s1304_s1 + $0x58] sm:$0xff]  ;;  %s712_s30 = sshll.u32 %s1022_s29, 4  ;;  %s713_s30 = int_to_ptr.vmem [resolvable:$true] %s712_s30 }
  0x14   :  { %818 = vmatmul.mubr.msk.f32.gmra.mrb[6].mxu0 %vm141_vm3, %v36_v18  ;;  %103 = vperm.xlu0 %991, %v53_v21   ;;  %v55_v25 = vld [vmem:[%s1305_s2 + $0x50] sm:$0xff]  ;;  %v56_v27 = vld [vmem:[%s1305_s2 + $0x58] sm:$0xff]  ;;  %v41_v28 = vld [vmem:[%s1304_s1 + $0x60] sm:$0xff]  ;;  %s993_s8 = scalar_lea.vmem %s713_s30, 128  ;;  %p998_p1 = scmp.lt.s32.totalorder %s713_s30, %s713_s30 }
  0x15   :  { %820 = vmatprep.mubr.msk.f32.mxu0 %vm141_vm3, %v37_v20  ;;  %v57_v29 = vld [vmem:[%s1305_s2 + $0x60] sm:$0xff]  ;;  %v42_v30 = vld [vmem:[%s1304_s1 + $0x68] sm:$0xff]  ;;  %v43_v32 = vld [vmem:[%s1304_s1 + $0x70] sm:$0xff]  ;;  %p994_p0 = scmp.ne.s32.totalorder %s713_s30, %s993_s8  ;;  %p999_p2 = scmp.lt.s32.totalorder %s993_s8, %s993_s8 }
  0x16   :  { %108 = vperm.xlu1 %992, %v54_v23   ;;  %v58_v31 = vld [vmem:[%s1305_s2 + $0x68] sm:$0xff]  ;;  %v59_v33 = vld [vmem:[%s1305_s2 + $0x70] sm:$0xff]  ;;  %v44_v34 = vld [vmem:[%s1304_s1 + $0x78] sm:$0xff] }
  0x17   :  { %v60_v35 = vld [vmem:[%s1305_s2 + $0x78] sm:$0xff]  ;;  %v371_v36 = vld [vmem:[%s1307_s4] sm:$0xff]  ;;  %v372_v37 = vld [vmem:[%s1307_s4 + $0x8] sm:$0xff]  ;;  %p1000_p3 = por %p999_p2, %p998_p1 }
  0x18   :  { %821 = vmatmul.mubr.msk.f32.gmra.mrb[8].mxu0 %vm141_vm3, %v38_v22  ;;  %113 = vperm.xlu0 %991, %v55_v25   ;;  %v373_v38 = vld [vmem:[%s1307_s4 + $0x10] sm:$0xff]  ;;  %v374_v39 = vld [vmem:[%s1307_s4 + $0x18] sm:$0xff]  ;;  %v375_v40 = vld [vmem:[%s1307_s4 + $0x20] sm:$0xff] }
  0x19   :  { %823 = vmatprep.mubr.msk.f32.mxu0 %vm141_vm3, %v39_v24  ;;  %v376_v41 = vld [vmem:[%s1307_s4 + $0x28] sm:$0xff]  ;;  %v377_v42 = vld [vmem:[%s1307_s4 + $0x30] sm:$0xff]  ;;  %v378_v43 = vld [vmem:[%s1307_s4 + $0x38] sm:$0xff]  ;;  %p1001_p4 = pnand %p1000_p3, %p994_p0 }
  0x1a   :  { %118 = vperm.xlu1 %992, %v56_v27   ;;  %v379_v44 = vld [vmem:[%s1307_s4 + $0x40] sm:$0xff]  ;;  %v380_v45 = vld [vmem:[%s1307_s4 + $0x48] sm:$0xff]  ;;  %v381_v46 = vld [vmem:[%s1307_s4 + $0x50] sm:$0xff] }
  0x1b   :  { %v382_v47 = vld [vmem:[%s1307_s4 + $0x58] sm:$0xff]  ;;  %v383_v48 = vld [vmem:[%s1307_s4 + $0x60] sm:$0xff]  ;;  %v384_v49 = vld [vmem:[%s1307_s4 + $0x68] sm:$0xff] }
  0x1c   :  { %824 = vmatmul.mubr.msk.f32.gmra.mrb[10].mxu0 %vm141_vm3, %v40_v26  ;;  %123 = vperm.xlu0 %991, %v57_v29   ;;  %v385_v50 = vld [vmem:[%s1307_s4 + $0x70] sm:$0xff]  ;;  %v386_v51 = vld [vmem:[%s1307_s4 + $0x78] sm:$0xff]  ;;  %v629_v52 = vld [vmem:[%s1309_s6] sm:$0xff] }
  0x1d   :  { %826 = vmatprep.mubr.msk.f32.mxu0 %vm141_vm3, %v41_v28  ;;  %v355_v53 = vld [vmem:[%s1306_s3] sm:$0xff] }
  0x1e   :  { %128 = vperm.xlu1 %992, %v58_v31   ;;  %864 = vmatprep.mubr.f32.mxu1 %v355_v53 }
  0x20   :  { %827 = vmatmul.mubr.msk.f32.gmra.mrb[12].mxu0 %vm141_vm3, %v42_v30  ;;  %133 = vperm.xlu0 %991, %v59_v33  }
  0x21   :  { %829 = vmatprep.mubr.msk.f32.mxu0 %vm141_vm3, %v43_v32 }
  0x22   :  { %138 = vperm.xlu1 %992, %v60_v35  }
  0x24   :  { %830 = vmatmul.mubr.msk.f32.gmra.mrb[14].mxu0 %vm141_vm3, %v44_v34  ;;  %389 = vperm.xlu0 %991, %v371_v36  }
  0x26   :  { %394 = vperm.xlu1 %992, %v372_v37  }
  0x28   :  { %399 = vperm.xlu0 %991, %v373_v38  }
  0x2a   :  { %404 = vperm.xlu1 %992, %v374_v39  }
  0x2c   :  { %409 = vperm.xlu0 %991, %v375_v40  }
  0x2e   :  { %414 = vperm.xlu1 %992, %v376_v41  }
  0x30   :  { %419 = vperm.xlu0 %991, %v377_v42  }
  0x32   :  { %424 = vperm.xlu1 %992, %v378_v43  }
  0x34   :  { %429 = vperm.xlu0 %991, %v379_v44  }
  0x36   :  { %434 = vperm.xlu1 %992, %v380_v45  }
  0x38   :  { %439 = vperm.xlu0 %991, %v381_v46  }
  0x3a   :  { %444 = vperm.xlu1 %992, %v382_v47  }
  0x3c   :  { %449 = vperm.xlu0 %991, %v383_v48  }
  0x3e   :  { %454 = vperm.xlu1 %992, %v384_v49  }
  0x40   :  { %459 = vperm.xlu0 %991, %v385_v50  }
  0x42   :  { %464 = vperm.xlu1 %992, %v386_v51  }
  0x44   :  { %632 = vperm.xlu0 %991, %v629_v52  }
  0x83   :  { %v64_v55 = vpop.permute.xlu0 %63 }
  0x84   :  { %v74_v54 = vpop.permute.xlu1 %73 }
  0x87   :  { %v69_v57 = vpop.permute.xlu0 %68 }
  0x88   :  { %v79_v56 = vpop.permute.xlu1 %78 }
  0x8b   :  { %v84_v59 = vpop.permute.xlu0 %83 }
  0x8c   :  { %v89_v58 = vpop.permute.xlu1 %88 }
  0x8f   :  { %v94_v4 = vpop.permute.xlu0 %93 }
  0x91   :  { %v99_v1 = vpop.permute.xlu1 %98 }
  0x93   :  { %v104_v17 = vpop.permute.xlu0 %103 }
  0x95   :  { %v109_v14 = vpop.permute.xlu1 %108 }
  0x97   :  { %v114_v29 = vpop.permute.xlu0 %113 }
  0x99   :  { %v119_v26 = vpop.permute.xlu1 %118 }
  0x9b   :  { %v124_v42 = vpop.permute.xlu0 %123 }
  0x9d   :  { %v129_v39 = vpop.permute.xlu1 %128 }
  0xa1   :  { %v139_v51 = vpop.permute.xlu1 %138 }
  0xdb   :  { %v810_v60 = vpop.f32.mrb[0].mxu0 }
  0xdc   :  { %v266_v61 = vadd.f32 %v810_v60, %v69_v57  ;;  %v260_v62 = vpop.f32.mrb[1].mxu0 }
  0xdd   :  { %v261_v63 = vadd.f32 %v260_v62, %v64_v55  ;;  %v356_v62 = vld [vmem:[%s1306_s3 + $0x8] sm:$0xff] }
  0xde   :  { %v340_v0 = vmax.f32 %v266_v61, 0.0 }
  0xdf   :  { %v339_v2 = vmax.f32 %v261_v63, 0.0  ;;  %v813_v3 = vpop.f32.mrb[2].mxu0  ;;  %v357_v63 = vld [vmem:[%s1306_s3 + $0x10] sm:$0xff] }
  0xe0   :  { %v276_v5 = vadd.f32 %v813_v3, %v79_v56  ;;  %v270_v6 = vpop.f32.mrb[3].mxu0  ;;  %v361_v3 = vld [vmem:[%s1306_s3 + $0x30] sm:$0xff] }
  0xe1   :  { %v271_v7 = vadd.f32 %v270_v6, %v74_v54  ;;  %v929_v8 = vpack.c.bf16 %v340_v0, %v339_v2  ;;  %v134_v54 = vpop.permute.xlu0 %133  ;;  %v358_v0 = vld [vmem:[%s1306_s3 + $0x18] sm:$0xff]  ;;  %v360_v2 = vld [vmem:[%s1306_s3 + $0x28] sm:$0xff] }
  0xe2   :  { %v342_v9 = vmax.f32 %v276_v5, 0.0  ;;  %v363_v5 = vld [vmem:[%s1306_s3 + $0x40] sm:$0xff]  ;;  %v364_v6 = vld [vmem:[%s1306_s3 + $0x48] sm:$0xff] }
  0xe3   :  { %v341_v10 = vmax.f32 %v271_v7, 0.0  ;;  %v816_v11 = vpop.f32.mrb[4].mxu0  ;;  %930 = vmatprep.subr.bf16.mxu1 %v929_v8  ;;  %v365_v7 = vld [vmem:[%s1306_s3 + $0x50] sm:$0xff] }
  0xe4   :  { %v286_v12 = vadd.f32 %v816_v11, %v89_v58  ;;  %v280_v13 = vpop.f32.mrb[5].mxu0  ;;  %932 = vmatpush3.bf16.msra.mxu1 %v929_v8  ;;  %v366_v8 = vld [vmem:[%s1306_s3 + $0x58] sm:$0xff]  ;;  %v369_v11 = vld [vmem:[%s1306_s3 + $0x70] sm:$0xff] }
  0xe5   :  { %v933_v15 = vpack.c.bf16 %v342_v9, %v341_v10  ;;  %v281_v16 = vadd.f32 %v280_v13, %v84_v59  ;;  %v367_v9 = vld [vmem:[%s1306_s3 + $0x60] sm:$0xff]  ;;  %v368_v10 = vld [vmem:[%s1306_s3 + $0x68] sm:$0xff]  ;;  %v1019_v13 = vmov 0.0|0.0  }
  0xe6   :  { %v344_v18 = vmax.f32 %v286_v12, 0.0  ;;  %v370_v12 = vld [vmem:[%s1306_s3 + $0x78] sm:$0xff]  ;;  %961 = vmatprep.subr.bf16.mxu0 %v1019_v13 }
  0xe7   :  { %v343_v19 = vmax.f32 %v281_v16, 0.0  ;;  %v819_v20 = vpop.f32.mrb[6].mxu0  ;;  %934 = vmatprep.subr.bf16.mxu1 %v933_v15  ;;  %v390_v16 = vpop.permute.xlu0 %389 }
  0xe8   :  { %v296_v21 = vadd.f32 %v819_v20, %v99_v1  ;;  %v290_v22 = vpop.f32.mrb[7].mxu0  ;;  %936 = vmatpush3.bf16.msra.mxu1 %v933_v15  ;;  %v359_v1 = vld [vmem:[%s1306_s3 + $0x20] sm:$0xff]  ;;  %v395_v15 = vpop.permute.xlu1 %394 }
  0xe9   :  { %v937_v23 = vpack.c.bf16 %v344_v18, %v343_v19  ;;  %v291_v24 = vadd.f32 %v290_v22, %v94_v4  ;;  %v362_v4 = vld [vmem:[%s1306_s3 + $0x38] sm:$0xff] }
  0xea   :  { %v346_v25 = vmax.f32 %v296_v21, 0.0 }
  0xeb   :  { %v345_v27 = vmax.f32 %v291_v24, 0.0  ;;  %v822_v28 = vpop.f32.mrb[8].mxu0  ;;  %938 = vmatprep.subr.bf16.mxu1 %v937_v23  ;;  %v400_v18 = vpop.permute.xlu0 %399 }
  0xec   :  { %v306_v30 = vadd.f32 %v822_v28, %v109_v14  ;;  %v300_v31 = vpop.f32.mrb[9].mxu0  ;;  %940 = vmatpush3.bf16.msra.mxu1 %v937_v23  ;;  %v1021_v14 = vmov 0.0  }
  0xed   :  { %v941_v32 = vpack.c.bf16 %v346_v25, %v345_v27  ;;  %v301_v33 = vadd.f32 %v300_v31, %v104_v17  ;;  %920 = vmatprep.mubr.msk.f32.mxu0 %vm1020_vm4, %v1021_v14  ;;  %v405_v17 = vpop.permute.xlu1 %404 }
  0xee   :  { %v348_v34 = vmax.f32 %v306_v30, 0.0 }
  0xef   :  { %v347_v35 = vmax.f32 %v301_v33, 0.0  ;;  %v825_v36 = vpop.f32.mrb[10].mxu0  ;;  %942 = vmatprep.subr.bf16.mxu1 %v941_v32  ;;  %v410_v20 = vpop.permute.xlu0 %409 }
  0xf0   :  { %v316_v37 = vadd.f32 %v825_v36, %v119_v26  ;;  %v310_v38 = vpop.f32.mrb[11].mxu0  ;;  %944 = vmatpush3.bf16.msra.mxu1 %v941_v32 }
  0xf1   :  { %v945_v40 = vpack.c.bf16 %v348_v34, %v347_v35  ;;  %v311_v41 = vadd.f32 %v310_v38, %v114_v29  ;;  %v415_v19 = vpop.permute.xlu1 %414 }
  0xf2   :  { %v350_v43 = vmax.f32 %v316_v37, 0.0 }
  0xf3   :  { %v349_v44 = vmax.f32 %v311_v41, 0.0  ;;  %v828_v45 = vpop.f32.mrb[12].mxu0  ;;  %946 = vmatprep.subr.bf16.mxu1 %v945_v40  ;;  %v420_v29 = vpop.permute.xlu0 %419 }
  0xf4   :  { %v326_v46 = vadd.f32 %v828_v45, %v129_v39  ;;  %v320_v47 = vpop.f32.mrb[13].mxu0  ;;  %948 = vmatpush3.bf16.msra.mxu1 %v945_v40 }
  0xf5   :  { %v949_v48 = vpack.c.bf16 %v350_v43, %v349_v44  ;;  %v321_v49 = vadd.f32 %v320_v47, %v124_v42  ;;  %v425_v26 = vpop.permute.xlu1 %424 }
  0xf6   :  { %v352_v50 = vmax.f32 %v326_v46, 0.0 }
  0xf7   :  { %v351_v52 = vmax.f32 %v321_v49, 0.0  ;;  %v831_v53 = vpop.f32.mrb[14].mxu0  ;;  %950 = vmatprep.subr.bf16.mxu1 %v949_v48  ;;  %v430_v42 = vpop.permute.xlu0 %429 }
  0xf8   :  { %v336_v55 = vadd.f32 %v831_v53, %v139_v51  ;;  %v330_v56 = vpop.f32.mrb[15].mxu0  ;;  %952 = vmatpush3.bf16.msra.mxu1 %v949_v48 }
  0xf9   :  { %v953_v57 = vpack.c.bf16 %v352_v50, %v351_v52  ;;  %v331_v58 = vadd.f32 %v330_v56, %v134_v54  ;;  %v435_v39 = vpop.permute.xlu1 %434 }
  0xfa   :  { %v354_v59 = vmax.f32 %v336_v55, 0.0 }
  0xfb   :  { %v353_v60 = vmax.f32 %v331_v58, 0.0  ;;  %954 = vmatprep.subr.bf16.mxu1 %v953_v57  ;;  %v440_v54 = vpop.permute.xlu0 %439 }
  0xfc   :  { %956 = vmatpush3.bf16.msra.mxu1 %v953_v57 }
  0xfd   :  { %v957_v61 = vpack.c.bf16 %v354_v59, %v353_v60  ;;  %v445_v51 = vpop.permute.xlu1 %444 }
  0xff   :  { %958 = vmatprep.subr.bf16.mxu1 %v957_v61 }
 0x100   :  { %960 = vmatpush3.bf16.msra.mxu1 %v957_v61 }
 0x103   :  { %865 = vmatmul.mubr.f32.vlgmr.msra.gmra.mrb[0].mxu1 %v356_v62 }
 0x104   :  { %867 = vmatprep.mubr.f32.mxu1 %v357_v63 }
 0x107   :  { %868 = vmatmul.mubr.f32.gmra.mrb[2].mxu1 %v358_v0  ;;  %v455_v0 = vpop.permute.xlu1 %454 }
 0x108   :  { %870 = vmatprep.mubr.f32.mxu1 %v359_v1 }
 0x10b   :  { %871 = vmatmul.mubr.f32.gmra.mrb[4].mxu1 %v360_v2 }
 0x10c   :  { %873 = vmatprep.mubr.f32.mxu1 %v361_v3  ;;  %v450_v3 = vpop.permute.xlu0 %449 }
 0x10f   :  { %874 = vmatmul.mubr.f32.gmra.mrb[6].mxu1 %v362_v4 }
 0x110   :  { %876 = vmatprep.mubr.f32.mxu1 %v363_v5 }
 0x113   :  { %877 = vmatmul.mubr.f32.gmra.mrb[8].mxu1 %v364_v6 }
 0x114   :  { %879 = vmatprep.mubr.f32.mxu1 %v365_v7 }
 0x117   :  { %880 = vmatmul.mubr.f32.gmra.mrb[10].mxu1 %v366_v8 }
 0x118   :  { %882 = vmatprep.mubr.f32.mxu1 %v367_v9 }
 0x11b   :  { %883 = vmatmul.mubr.f32.gmra.mrb[12].mxu1 %v368_v10 }
 0x11c   :  { %885 = vmatprep.mubr.f32.mxu1 %v369_v11 }
 0x11f   :  { %886 = vmatmul.mubr.f32.gmra.mrb[14].mxu1 %v370_v12  ;;  %v465_v12 = vpop.permute.xlu1 %464 }
 0x1d6   :  { %v866_v21 = vpop.f32.mrb[0].mxu1 }
 0x1d7   :  { %v539_v22 = vadd.f32 %v866_v21, %v395_v15  ;;  %v533_v23 = vpop.f32.mrb[1].mxu1 }
 0x1d8   :  { %v534_v24 = vadd.f32 %v533_v23, %v390_v16  ;;  %v460_v16 = vpop.permute.xlu0 %459 }
 0x1d9   :  { %v613_v25 = vmax.f32 %v539_v22, 0.0 }
 0x1da   :  { %v612_v27 = vmax.f32 %v534_v24, 0.0  ;;  %v869_v28 = vpop.f32.mrb[2].mxu1  ;;  %v628_v24 = vld [vmem:[%s1308_s5] sm:$0xff] }
 0x1db   :  { %v549_v30 = vadd.f32 %v869_v28, %v405_v17  ;;  %v543_v31 = vpop.f32.mrb[3].mxu1 }
 0x1dc   :  { %v962_v32 = vpack.c.bf16 %v613_v25, %v612_v27  ;;  %v544_v33 = vadd.f32 %v543_v31, %v400_v18  ;;  %v633_v25 = vpop.permute.xlu0 %632 }
 0x1dd   :  { %v615_v34 = vmax.f32 %v549_v30, 0.0 }
 0x1de   :  { %v614_v35 = vmax.f32 %v544_v33, 0.0  ;;  %v872_v36 = vpop.f32.mrb[4].mxu1  ;;  %963 = vmatpush3.bf16.msra.mxu0 %v962_v32 }
 0x1df   :  { %v559_v37 = vadd.f32 %v872_v36, %v415_v19  ;;  %v553_v38 = vpop.f32.mrb[5].mxu1  ;;  %964 = vmatprep.subr.bf16.mxu0 %v1019_v13 }
 0x1e0   :  { %v965_v40 = vpack.c.bf16 %v615_v34, %v614_v35  ;;  %v554_v41 = vadd.f32 %v553_v38, %v410_v20 }
 0x1e1   :  { %v617_v43 = vmax.f32 %v559_v37, 0.0 }
 0x1e2   :  { %v616_v44 = vmax.f32 %v554_v41, 0.0  ;;  %v875_v45 = vpop.f32.mrb[6].mxu1  ;;  %966 = vmatpush3.bf16.msra.mxu0 %v965_v40 }
 0x1e3   :  { %v569_v46 = vadd.f32 %v875_v45, %v425_v26  ;;  %v563_v47 = vpop.f32.mrb[7].mxu1  ;;  %967 = vmatprep.subr.bf16.mxu0 %v1019_v13 }
 0x1e4   :  { %v968_v48 = vpack.c.bf16 %v617_v43, %v616_v44  ;;  %v564_v49 = vadd.f32 %v563_v47, %v420_v29 }
 0x1e5   :  { %v619_v50 = vmax.f32 %v569_v46, 0.0 }
 0x1e6   :  { %v618_v52 = vmax.f32 %v564_v49, 0.0  ;;  %v878_v53 = vpop.f32.mrb[8].mxu1  ;;  %969 = vmatpush3.bf16.msra.mxu0 %v968_v48 }
 0x1e7   :  { %v579_v55 = vadd.f32 %v878_v53, %v435_v39  ;;  %v573_v56 = vpop.f32.mrb[9].mxu1  ;;  %970 = vmatprep.subr.bf16.mxu0 %v1019_v13 }
 0x1e8   :  { %v971_v57 = vpack.c.bf16 %v619_v50, %v618_v52  ;;  %v574_v58 = vadd.f32 %v573_v56, %v430_v42 }
 0x1e9   :  { %v621_v59 = vmax.f32 %v579_v55, 0.0 }
 0x1ea   :  { %v620_v60 = vmax.f32 %v574_v58, 0.0  ;;  %v881_v61 = vpop.f32.mrb[10].mxu1  ;;  %972 = vmatpush3.bf16.msra.mxu0 %v971_v57 }
 0x1eb   :  { %v589_v62 = vadd.f32 %v881_v61, %v445_v51  ;;  %v583_v63 = vpop.f32.mrb[11].mxu1  ;;  %973 = vmatprep.subr.bf16.mxu0 %v1019_v13 }
 0x1ec   :  { %v974_v1 = vpack.c.bf16 %v621_v59, %v620_v60  ;;  %v584_v2 = vadd.f32 %v583_v63, %v440_v54 }
 0x1ed   :  { %v623_v4 = vmax.f32 %v589_v62, 0.0 }
 0x1ee   :  { %v622_v5 = vmax.f32 %v584_v2, 0.0  ;;  %v884_v6 = vpop.f32.mrb[12].mxu1  ;;  %975 = vmatpush3.bf16.msra.mxu0 %v974_v1 }
 0x1ef   :  { %v599_v7 = vadd.f32 %v884_v6, %v455_v0  ;;  %v593_v8 = vpop.f32.mrb[13].mxu1  ;;  %976 = vmatprep.subr.bf16.mxu0 %v1019_v13 }
 0x1f0   :  { %v977_v9 = vpack.c.bf16 %v623_v4, %v622_v5  ;;  %v594_v10 = vadd.f32 %v593_v8, %v450_v3 }
 0x1f1   :  { %v625_v11 = vmax.f32 %v599_v7, 0.0 }
 0x1f2   :  { %v624_v14 = vmax.f32 %v594_v10, 0.0  ;;  %v887_v15 = vpop.f32.mrb[14].mxu1  ;;  %978 = vmatpush3.bf16.msra.mxu0 %v977_v9 }
 0x1f3   :  { %v609_v17 = vadd.f32 %v887_v15, %v465_v12  ;;  %v603_v18 = vpop.f32.mrb[15].mxu1  ;;  %979 = vmatprep.subr.bf16.mxu0 %v1019_v13 }
 0x1f4   :  { %v980_v19 = vpack.c.bf16 %v625_v11, %v624_v14  ;;  %v604_v20 = vadd.f32 %v603_v18, %v460_v16 }
 0x1f5   :  { %v627_v21 = vmax.f32 %v609_v17, 0.0 }
 0x1f6   :  { %v626_v22 = vmax.f32 %v604_v20, 0.0  ;;  %981 = vmatpush3.bf16.msra.mxu0 %v980_v19 }
 0x1f7   :  { %982 = vmatprep.subr.bf16.mxu0 %v1019_v13 }
 0x1f8   :  { %v983_v23 = vpack.c.bf16 %v627_v21, %v626_v22 }
 0x1fa   :  { %984 = vmatpush3.bf16.msra.mxu0 %v983_v23 }
 0x1fd   :  { %921 = vmatmul.mubr.f32.vlgmr.msra.gmra.mrb[16].mxu0 %v628_v24 }
 0x2d0   :  { %v701_v26 = vpop.f32.mrb[16].mxu0 }
 0x2d1   :  { %v702_v27 = vadd.f32 %v701_v26, %v633_v25  ;;  %v922_v28 = vpop.f32.mrb[17].mxu0 }
 0x2d3   :  { %705 = vst [vmem:[#allocation2] sm:$0xff] %v702_v27 }
 0x2d4   :  { %1004 = shalt.err (!%p1001_p4)
}
 0x2d5   :  { %s1005_s5 = scalar_lea.hbm %s1310_s7, 128 }
 0x2d6   :  { %p1006_p5 = scmp.ne.s32.totalorder %s1310_s7, %s1005_s5  ;;  %p1009_p6 = scmp.lt.u32.totalorder %s1005_s5, %s1310_s7 }
 0x2d8   :  { %p1011_p7 = pnand %p1009_p6, %p1006_p5 }
 0x2da   :  { %1014 = shalt.err (!%p1011_p7)
}
 0x2db   :  { %715 = dma.vmem_to_hbm [thread:$0]  %s713_s30, 128, %s1310_s7, [#allocation3]  }
 0x2dc   :  { %1015 = dma.done.wait [#allocation3], 128  }
 0x2dd   :  { %1016 = vsyncadd [#allocation3], 4294967168 }
 0x2de   :  { %719 = vsyncpa [#allocation3], 1 }

</bundles_post_ra>
